<compile_context>
chip_gen: v6e
topology: v6e:2x2x1
jax: 0.10.0
libtpu: 0.0.40
codegen_flags: <defaults>
</compile_context>

<pallas_src>
import functools

import jax
import jax.numpy as jnp
from jax import lax
from jax.experimental import pallas as pl
from jax.experimental.pallas import tpu as pltpu


_NT_DIMENSION_NUMBERS = (((1,), (1,)), ((), ()))   # contract last dims: A @ B^T


# ----------------------------- Pallas kernel ---------------------------------

def _critic_mlp_kernel(x_ref, a_ref, w1x_ref, w1a_ref, b1_ref,
                       w2_ref, b2_ref, w3_ref, b3_ref, o_ref):
    """Fused 3-layer MLP producing a lane-dense (1, TB) value row per grid step."""
    # Layer 1: torch.cat([x, acct], 1) @ W1 is folded into two matmuls on split W1.
    h1 = jnp.dot(x_ref[...], w1x_ref[...], preferred_element_type=jnp.float32)
    h1 = h1 + jnp.dot(a_ref[...], w1a_ref[...], preferred_element_type=jnp.float32)
    h1 = jnp.maximum(h1 + b1_ref[...], 0.0)                        # (TB, 512)
    # Layer 2.
    h2 = jnp.dot(h1, w2_ref[...], preferred_element_type=jnp.float32)
    h2 = jnp.maximum(h2 + b2_ref[...], 0.0)                        # (TB, 256)
    # Layer 3 (256 -> 1): w3_row @ h2^T gives the result already as a lane-dense
    # (1, TB) row, avoiding a masked 1-lane-wide output store.
    v = lax.dot_general(w3_ref[...], h2, _NT_DIMENSION_NUMBERS,
                        preferred_element_type=jnp.float32)        # (1, TB)
    o_ref[...] = (v + b3_ref[...]).astype(o_ref.dtype)


@functools.partial(jax.jit, static_argnames=("batch_tile",))
def critic_ppo_forward(x, current_account, params, *, batch_tile=256):
    """CriticPPO.forward (raw_data=False).

    x:               (B, D)  float32
    current_account: (B, A)  float32
    returns value:   (B, 1)  float32
    """
    B, D = x.shape
    _, A = current_account.shape
    w1x, w1a, b1 = params["w1x"], params["w1a"], params["b1"]
    w2, b2 = params["w2"], params["b2"]
    w3, b3 = params["w3"], params["b3"]
    H1, H2 = w1x.shape[1], w2.shape[1]

    # Batch tile: whole batch when small; otherwise a multiple of 128 so the
    # lane-dense (1, TB) output block satisfies the (8, 128) layout rule.
    if B <= batch_tile:
        tb = B
    else:
        tb = max(128, (batch_tile // 128) * 128)
    grid = (pl.cdiv(B, tb),)   # ragged final block handled by Pallas OOB masking

    # Default scoped VMEM is plenty up to TB ~1024; raise it only for huge tiles.
    vmem_limit = 64 * 1024 * 1024 if tb > 1024 else None

    out = pl.pallas_call(
        _critic_mlp_kernel,
        out_shape=jax.ShapeDtypeStruct((1, B), jnp.float32),
        grid_spec=pltpu.PrefetchScalarGridSpec(
            num_scalar_prefetch=0,
            grid=grid,
            in_specs=[
                pl.BlockSpec((tb, D), lambda i: (i, 0)),    # x tile
                pl.BlockSpec((tb, A), lambda i: (i, 0)),    # account tile
                pl.BlockSpec((D, H1), lambda i: (0, 0)),    # W1[:D]   (resident)
                pl.BlockSpec((A, H1), lambda i: (0, 0)),    # W1[D:]   (resident)
                pl.BlockSpec((1, H1), lambda i: (0, 0)),    # b1
                pl.BlockSpec((H1, H2), lambda i: (0, 0)),   # W2       (resident)
                pl.BlockSpec((1, H2), lambda i: (0, 0)),    # b2
                pl.BlockSpec((1, H2), lambda i: (0, 0)),    # W3 stored as (1, 256) row
                pl.BlockSpec((1, 1), lambda i: (0, 0)),     # b3
            ],
            out_specs=pl.BlockSpec((1, tb), lambda i: (0, i)),  # lane-dense value row
        ),
        compiler_params=pltpu.CompilerParams(
            dimension_semantics=("parallel",),
            vmem_limit_bytes=vmem_limit,
        ),
    )(x, current_account, w1x, w1a, b1, w2, b2, w3, b3)

    # (1, B) -> (B, 1): same element order, tiny reshape in the wrapper.
    return out.reshape(B, 1)


# ------------------------- deterministic parameter init ----------------------

def _linear_params(key, fan_in, fan_out):
    """PyTorch nn.Linear default init: U(-1/sqrt(fan_in), 1/sqrt(fan_in))."""
    kw, kb = jax.random.split(key)
    bound = 1.0 / jnp.sqrt(jnp.float32(fan_in))
    # stored (in, out): transpose of PyTorch's (out, in) weight layout.
    w = jax.random.uniform(kw, (fan_in, fan_out), jnp.float32, -bound, bound)
    b = jax.random.uniform(kb, (1, fan_out), jnp.float32, -bound, bound)
    return w, b


def init_critic_params(key, input_dim, account_feats=3):
    """Params for Linear(D+A,512) -> ReLU -> Linear(512,256) -> ReLU -> Linear(256,1).

    W1 is split once along its input axis so the kernel never needs a concat;
    W3 is stored as a (1, 256) row for the lane-dense final layer.
    """
    con_out = input_dim + account_feats
    k1, k2, k3 = jax.random.split(key, 3)
    w1, b1 = _linear_params(k1, con_out, 512)
    w2, b2 = _linear_params(k2, 512, 256)
    w3, b3 = _linear_params(k3, 256, 1)
    return {
        "w1x": w1[:input_dim], "w1a": w1[input_dim:], "b1": b1,
        "w2": w2, "b2": b2,
        "w3": jnp.transpose(w3), "b3": b3,           # (1, 256), (1, 1)
    }


# ------------------------------ reference (pure JAX) --------------------------

def critic_ppo_ref(x, current_account, params):
    w1 = jnp.concatenate([params["w1x"], params["w1a"]], axis=0)
    out = jnp.concatenate([x, current_account], axis=1)
    out = jnp.maximum(out @ w1 + params["b1"], 0.0)
    out = jnp.maximum(out @ params["w2"] + params["b2"], 0.0)
    return out @ jnp.transpose(params["w3"]) + params["b3"]


# ----------------------------------- main -------------------------------------

if __name__ == "__main__":
    key = jax.random.PRNGKey(0)
    k_x, k_a, k_p, k_x2, k_a2 = jax.random.split(key, 5)

    D = 29                # input_shape = (29,)
    ACCOUNT_FEATS = 3
    params = init_critic_params(k_p, D, ACCOUNT_FEATS)

    # Small case from the module spec (batch=2): single grid step, full-array blocks.
    B = 2
    x = jax.random.normal(k_x, (B, D), jnp.float32)
    acct = jax.random.normal(k_a, (B, ACCOUNT_FEATS), jnp.float32)
    value = critic_ppo_forward(x, acct, params)
    jax.block_until_ready(value)
    ref = critic_ppo_ref(x, acct, params)
    assert value.shape == (B, 1)
    assert jnp.allclose(value, ref, atol=1e-3, rtol=1e-3)

    # Tiled case: exercises grid > 1 and the lane-dense (1, TB) output blocks.
    B2 = 384
    x2 = jax.random.normal(k_x2, (B2, D), jnp.float32)
    acct2 = jax.random.normal(k_a2, (B2, ACCOUNT_FEATS), jnp.float32)
    value2 = critic_ppo_forward(x2, acct2, params, batch_tile=128)
    jax.block_until_ready(value2)
    ref2 = critic_ppo_ref(x2, acct2, params)
    assert value2.shape == (B2, 1)
    assert jnp.allclose(value2, ref2, atol=1e-3, rtol=1e-3)

    print("KERNEL_OK")
</pallas_src>

<mosaic_0001>
module attributes {stable_mosaic.version = 11 : i64} {
  func.func @_critic_mlp_kernel(%arg0: i32, %arg1: memref<2x29xf32, #tpu.memory_space<vmem>>, %arg2: memref<2x3xf32, #tpu.memory_space<vmem>>, %arg3: memref<29x512xf32, #tpu.memory_space<vmem>>, %arg4: memref<3x512xf32, #tpu.memory_space<vmem>>, %arg5: memref<1x512xf32, #tpu.memory_space<vmem>>, %arg6: memref<512x256xf32, #tpu.memory_space<vmem>>, %arg7: memref<1x256xf32, #tpu.memory_space<vmem>>, %arg8: memref<1x256xf32, #tpu.memory_space<vmem>>, %arg9: memref<1x1xf32, #tpu.memory_space<vmem>>, %arg10: memref<1x2xf32, #tpu.memory_space<vmem>>) attributes {dimension_semantics = [#tpu.dimension_semantics<parallel>], iteration_bounds = array<i64: 1>, scalar_prefetch = 0 : i64, scratch_operands = 0 : i64, tpu.core_type = #tpu.core_type<tc>, window_params = [{transform_indices = @transform_0, window_bounds = array<i64: 2, 29>}, {transform_indices = @transform_1, window_bounds = array<i64: 2, 3>}, {pipeline_mode = #tpu.pipeline_mode<synchronous>, transform_indices = @transform_2, window_bounds = array<i64: 29, 512>}, {pipeline_mode = #tpu.pipeline_mode<synchronous>, transform_indices = @transform_3, window_bounds = array<i64: 3, 512>}, {pipeline_mode = #tpu.pipeline_mode<synchronous>, transform_indices = @transform_4, window_bounds = array<i64: 1, 512>}, {pipeline_mode = #tpu.pipeline_mode<synchronous>, transform_indices = @transform_5, window_bounds = array<i64: 512, 256>}, {pipeline_mode = #tpu.pipeline_mode<synchronous>, transform_indices = @transform_6, window_bounds = array<i64: 1, 256>}, {pipeline_mode = #tpu.pipeline_mode<synchronous>, transform_indices = @transform_7, window_bounds = array<i64: 1, 256>}, {pipeline_mode = #tpu.pipeline_mode<synchronous>, transform_indices = @transform_8, window_bounds = array<i64: 1, 1>}, {transform_indices = @transform_9, window_bounds = array<i64: 1, 2>}]} {
    %c0 = arith.constant 0 : index
    %c0_0 = arith.constant 0 : index
    %0 = vector.load %arg1[%c0, %c0_0] : memref<2x29xf32, #tpu.memory_space<vmem>>, vector<2x29xf32>
    %c0_1 = arith.constant 0 : index
    %c0_2 = arith.constant 0 : index
    %1 = vector.load %arg3[%c0_1, %c0_2] : memref<29x512xf32, #tpu.memory_space<vmem>>, vector<29x512xf32>
    %cst = arith.constant dense<0.000000e+00> : vector<2x512xf32>
    %2 = tpu.matmul %0, %1, %cst {dimension_numbers = #tpu.dot_dimension_numbers<[1], [0], [0], [1], [0, 0, 1, 1], [], []>} : vector<2x29xf32>, vector<29x512xf32>, vector<2x512xf32> -> vector<2x512xf32>
    %c0_3 = arith.constant 0 : index
    %c0_4 = arith.constant 0 : index
    %3 = vector.load %arg2[%c0_3, %c0_4] : memref<2x3xf32, #tpu.memory_space<vmem>>, vector<2x3xf32>
    %c0_5 = arith.constant 0 : index
    %c0_6 = arith.constant 0 : index
    %4 = vector.load %arg4[%c0_5, %c0_6] : memref<3x512xf32, #tpu.memory_space<vmem>>, vector<3x512xf32>
    %cst_7 = arith.constant dense<0.000000e+00> : vector<2x512xf32>
    %5 = tpu.matmul %3, %4, %cst_7 {dimension_numbers = #tpu.dot_dimension_numbers<[1], [0], [0], [1], [0, 0, 1, 1], [], []>} : vector<2x3xf32>, vector<3x512xf32>, vector<2x512xf32> -> vector<2x512xf32>
    %6 = arith.addf %2, %5 : vector<2x512xf32>
    %c0_8 = arith.constant 0 : index
    %c0_9 = arith.constant 0 : index
    %7 = vector.load %arg5[%c0_8, %c0_9] : memref<1x512xf32, #tpu.memory_space<vmem>>, vector<1x512xf32>
    %8 = vector.broadcast %7 : vector<1x512xf32> to vector<2x512xf32>
    %9 = arith.addf %6, %8 : vector<2x512xf32>
    %cst_10 = arith.constant 0.000000e+00 : f32
    %10 = vector.broadcast %cst_10 : f32 to vector<2x512xf32>
    %11 = arith.maximumf %9, %10 : vector<2x512xf32>
    %c0_11 = arith.constant 0 : index
    %c0_12 = arith.constant 0 : index
    %12 = vector.load %arg6[%c0_11, %c0_12] : memref<512x256xf32, #tpu.memory_space<vmem>>, vector<512x256xf32>
    %cst_13 = arith.constant dense<0.000000e+00> : vector<2x256xf32>
    %13 = tpu.matmul %11, %12, %cst_13 {dimension_numbers = #tpu.dot_dimension_numbers<[1], [0], [0], [1], [0, 0, 1, 1], [], []>} : vector<2x512xf32>, vector<512x256xf32>, vector<2x256xf32> -> vector<2x256xf32>
    %c0_14 = arith.constant 0 : index
    %c0_15 = arith.constant 0 : index
    %14 = vector.load %arg7[%c0_14, %c0_15] : memref<1x256xf32, #tpu.memory_space<vmem>>, vector<1x256xf32>
    %15 = vector.broadcast %14 : vector<1x256xf32> to vector<2x256xf32>
    %16 = arith.addf %13, %15 : vector<2x256xf32>
    %cst_16 = arith.constant 0.000000e+00 : f32
    %17 = vector.broadcast %cst_16 : f32 to vector<2x256xf32>
    %18 = arith.maximumf %16, %17 : vector<2x256xf32>
    %c0_17 = arith.constant 0 : index
    %c0_18 = arith.constant 0 : index
    %19 = vector.load %arg8[%c0_17, %c0_18] : memref<1x256xf32, #tpu.memory_space<vmem>>, vector<1x256xf32>
    %cst_19 = arith.constant dense<0.000000e+00> : vector<1x2xf32>
    %20 = tpu.matmul %19, %18, %cst_19 {dimension_numbers = #tpu.dot_dimension_numbers<[1], [1], [0], [0], [0, 0, 1, 0], [], []>} : vector<1x256xf32>, vector<2x256xf32>, vector<1x2xf32> -> vector<1x2xf32>
    %c0_20 = arith.constant 0 : index
    %c0_21 = arith.constant 0 : index
    %21 = vector.load %arg9[%c0_20, %c0_21] : memref<1x1xf32, #tpu.memory_space<vmem>>, vector<1x1xf32>
    %22 = vector.broadcast %21 : vector<1x1xf32> to vector<1x2xf32>
    %23 = arith.addf %20, %22 : vector<1x2xf32>
    %c0_22 = arith.constant 0 : index
    %c0_23 = arith.constant 0 : index
    %24 = vector.load %arg10[%c0_22, %c0_23] : memref<1x2xf32, #tpu.memory_space<vmem>>, vector<1x2xf32>
    tpu.vector_store %arg10[%c0_22, %c0_23], %23 {strides = array<i32>} : memref<1x2xf32, #tpu.memory_space<vmem>>, vector<1x2xf32>,
    return
  }
  func.func @transform_0(%arg0: i32) -> (i32, i32) {
    %c0_i32 = arith.constant 0 : i32
    %c0_i32_0 = arith.constant 0 : i32
    return %arg0, %c0_i32 : i32, i32
  }
  func.func @transform_1(%arg0: i32) -> (i32, i32) {
    %c0_i32 = arith.constant 0 : i32
    %c0_i32_0 = arith.constant 0 : i32
    return %arg0, %c0_i32 : i32, i32
  }
  func.func @transform_2(%arg0: i32) -> (i32, i32) {
    %c0_i32 = arith.constant 0 : i32
    %c0_i32_0 = arith.constant 0 : i32
    %c0_i32_1 = arith.constant 0 : i32
    return %c0_i32, %c0_i32_0 : i32, i32
  }
  func.func @transform_3(%arg0: i32) -> (i32, i32) {
    %c0_i32 = arith.constant 0 : i32
    %c0_i32_0 = arith.constant 0 : i32
    %c0_i32_1 = arith.constant 0 : i32
    return %c0_i32, %c0_i32_0 : i32, i32
  }
  func.func @transform_4(%arg0: i32) -> (i32, i32) {
    %c0_i32 = arith.constant 0 : i32
    %c0_i32_0 = arith.constant 0 : i32
    %c0_i32_1 = arith.constant 0 : i32
    return %c0_i32, %c0_i32_0 : i32, i32
  }
  func.func @transform_5(%arg0: i32) -> (i32, i32) {
    %c0_i32 = arith.constant 0 : i32
    %c0_i32_0 = arith.constant 0 : i32
    %c0_i32_1 = arith.constant 0 : i32
    return %c0_i32, %c0_i32_0 : i32, i32
  }
  func.func @transform_6(%arg0: i32) -> (i32, i32) {
    %c0_i32 = arith.constant 0 : i32
    %c0_i32_0 = arith.constant 0 : i32
    %c0_i32_1 = arith.constant 0 : i32
    return %c0_i32, %c0_i32_0 : i32, i32
  }
  func.func @transform_7(%arg0: i32) -> (i32, i32) {
    %c0_i32 = arith.constant 0 : i32
    %c0_i32_0 = arith.constant 0 : i32
    %c0_i32_1 = arith.constant 0 : i32
    return %c0_i32, %c0_i32_0 : i32, i32
  }
  func.func @transform_8(%arg0: i32) -> (i32, i32) {
    %c0_i32 = arith.constant 0 : i32
    %c0_i32_0 = arith.constant 0 : i32
    %c0_i32_1 = arith.constant 0 : i32
    return %c0_i32, %c0_i32_0 : i32, i32
  }
  func.func @transform_9(%arg0: i32) -> (i32, i32) {
    %c0_i32 = arith.constant 0 : i32
    %c0_i32_0 = arith.constant 0 : i32
    return %c0_i32, %arg0 : i32, i32
  }
}

</mosaic_0001>

<bundles_post_ra>
// kernel: critic_ppo_forward.1
= control target key start
LH: loop header
LB: loop body
LE: loop exit
PB: predicated region body
PF: predicated region fallthrough
CT: control target
= control target key end

     0   :  { %s1111_s0 = inlined_call_operand.hbm [shape: f32[2,29], index: 0, kind: input, shape index: {}]   ;;  %s1112_s1 = inlined_call_operand.hbm [shape: f32[2,3], index: 1, kind: input, shape index: {}]   ;;  %s1113_s2 = inlined_call_operand.hbm [shape: f32[29,512], index: 2, kind: input, shape index: {}]   ;;  %s1114_s3 = inlined_call_operand.hbm [shape: f32[3,512], index: 3, kind: input, shape index: {}]   ;;  %s1115_s4 = inlined_call_operand.vmem [shape: f32[1,512], index: 4, kind: input, shape index: {}]   ;;  %s1116_s5 = inlined_call_operand.hbm [shape: f32[512,256], index: 5, kind: input, shape index: {}]   ;;  %s1117_s6 = inlined_call_operand.vmem [shape: f32[1,256], index: 6, kind: input, shape index: {}]   ;;  %s1118_s7 = inlined_call_operand.vmem [shape: f32[1,256], index: 7, kind: input, shape index: {}]   ;;  %s1119_s8 = inlined_call_operand.<no memory space> [shape: f32[1,1], index: 8, kind: input, shape index: {}]   ;;  %s1120_s9 = inlined_call_operand.hbm [shape: f32[1,2], index: 9, kind: output, shape index: {}]  }
   0x1   :  { %v14_v0 = vstv %s1119_s8 }
   0x2   :  { %15 = vst [vmem:[#allocation2] sm:$0x1] %v14_v0 }
   0x3   :  { %16 = vsyncpa [#allocation4], 0 }
   0x4   :  { %17 = vsyncpa [#allocation7], 0 }
   0x5   :  { %18 = vsyncpa [#allocation10], 0 }
   0x6   :  { %19 = vsyncpa [#allocation5], 0  ;;  %s1015_s11 = smov [#allocation6]   ;;  %s1016_s13 = smov [#allocation9]  }
   0x7   :  { %s36_s12 = sshll.u32 %s1015_s11, 4  ;;  %s58_s14 = sshll.u32 %s1016_s13, 4  ;;  %s37_s12 = int_to_ptr.vmem [resolvable:$true] %s36_s12  ;;  %s59_s14 = int_to_ptr.vmem [resolvable:$true] %s58_s14 }
   0x8   :  { %s895_s15 = scalar_lea.vmem %s37_s12, 32  ;;  %p900_p1 = scmp.lt.s32.totalorder %s37_s12, %s37_s12 }
   0x9   :  { %p896_p0 = scmp.ne.s32.totalorder %s37_s12, %s895_s15  ;;  %p901_p2 = scmp.lt.s32.totalorder %s895_s15, %s895_s15 }
   0xb   :  { %p902_p3 = por %p901_p2, %p900_p1 }
   0xd   :  { %p903_p4 = pnand %p902_p3, %p896_p0 }
   0xf   :  { %906 = shalt.err (!%p903_p4)
}
  0x10   :  { %39 = dma.hbm_to_vmem [thread:$0]  %s1112_s1, 32, %s37_s12, [#allocation7]  }
  0x11   :  { %s915_s17 = scalar_lea.vmem %s59_s14, 256  ;;  %p920_p6 = scmp.lt.s32.totalorder %s59_s14, %s59_s14 }
  0x12   :  { %p916_p5 = scmp.ne.s32.totalorder %s59_s14, %s915_s17  ;;  %p921_p7 = scmp.lt.s32.totalorder %s915_s17, %s915_s17 }
  0x14   :  { %p922_p8 = por %p921_p7, %p920_p6 }
  0x16   :  { %p923_p9 = pnand %p922_p8, %p916_p5 }
  0x18   :  { %926 = shalt.err (!%p923_p9)
}
  0x19   :  { %61 = dma.hbm_to_vmem [thread:$0]  %s1114_s3, 256, %s59_s14, [#allocation10]  }
  0x1a   :  { %s1017_s20 = smov [#allocation3]   ;;  %s1018_s22 = smov [#allocation8]  }
  0x1b   :  { %s26_s21 = sshll.u32 %s1017_s20, 4  ;;  %s45_s23 = sshll.u32 %s1018_s22, 4  ;;  %s27_s21 = int_to_ptr.vmem [resolvable:$true] %s26_s21  ;;  %s46_s23 = int_to_ptr.vmem [resolvable:$true] %s45_s23 }
  0x1c   :  { %s935_s24 = scalar_lea.vmem %s27_s21, 32  ;;  %p940_p11 = scmp.lt.s32.totalorder %s27_s21, %s27_s21 }
  0x1d   :  { %p936_p10 = scmp.ne.s32.totalorder %s27_s21, %s935_s24  ;;  %p941_p12 = scmp.lt.s32.totalorder %s935_s24, %s935_s24 }
  0x1f   :  { %p942_p13 = por %p941_p12, %p940_p11 }
  0x21   :  { %p943_p0 = pnand %p942_p13, %p936_p10 }
  0x23   :  { %946 = shalt.err (!%p943_p0)
}
  0x24   :  { %29 = dma.hbm_to_vmem [thread:$0]  %s1111_s0, 32, %s27_s21, [#allocation4]  }
  0x25   :  { %s955_s26 = scalar_lea.vmem %s46_s23, 2048  ;;  %p960_p2 = scmp.lt.s32.totalorder %s46_s23, %s46_s23 }
  0x26   :  { %p956_p1 = scmp.ne.s32.totalorder %s46_s23, %s955_s26  ;;  %p961_p3 = scmp.lt.s32.totalorder %s955_s26, %s955_s26 }
  0x28   :  { %p962_p4 = por %p961_p3, %p960_p2 }
  0x2a   :  { %p963_p5 = pnand %p962_p4, %p956_p1 }
  0x2c   :  { %966 = shalt.err (!%p963_p5)
}
  0x2d   :  { %s1019_s3 = smov 512   ;;  %s1020_s27 = smov 32  }
  0x2e   :  { %51 = dma.hbm_to_vmem [thread:$0]  %s1113_s2, 2048, %s46_s23, [#allocation7], %s1019_s3, %s1019_s3, %s1020_s27  }
  0x2f   :  { %s1021_s30 = smov [#allocation11]  }
  0x30   :  { %s69_s10 = sshll.u32 %s1021_s30, 4  ;;  %s70_s10 = int_to_ptr.vmem [resolvable:$true] %s69_s10 }
  0x31   :  { %s975_s11 = scalar_lea.vmem %s70_s10, 16384  ;;  %p980_p7 = scmp.lt.s32.totalorder %s70_s10, %s70_s10 }
  0x32   :  { %p976_p6 = scmp.ne.s32.totalorder %s70_s10, %s975_s11  ;;  %p981_p8 = scmp.lt.s32.totalorder %s975_s11, %s975_s11 }
  0x34   :  { %p982_p9 = por %p981_p8, %p980_p7 }
  0x36   :  { %p983_p10 = pnand %p982_p9, %p976_p6 }
  0x38   :  { %986 = shalt.err (!%p983_p10)
}
  0x39   :  { %s1022_s0 = smov 256   ;;  %s1023_s12 = smov 16  }
  0x3a   :  { %75 = dma.hbm_to_vmem [thread:$0]  %s1116_s5, 16384, %s70_s10, [#allocation10], %s1022_s0, %s1022_s0, %s1023_s12  }
  0x3b   :  { %1007 = dma.done.wait [#allocation4], 32  }
  0x3c   :  { %1008 = vsyncadd [#allocation4], 4294967264 }
  0x3d   :  { %1009 = dma.done.wait [#allocation7], 2080  }
  0x3e   :  { %1010 = vsyncadd [#allocation7], 4294965216 }
  0x3f   :  { %1011 = dma.done.wait [#allocation10], 16640  }
  0x40   :  { %1012 = vsyncadd [#allocation10], 4294950656  ;;  %v1024_v1 = vmov 0.0   ;;  %v115_v2 = vld [vmem:[#allocation9] sm:$0x77]  ;;  %vm125_vm0 = vcmask 1042432  }
  0x41   :  { %198 = vmatprep.mubr.f32.mxu0 %v1024_v1  ;;  %269 = vmatprep.mubr.f32.mxu1 %v1024_v1  ;;  %v116_v3 = vld [vmem:[#allocation9 + $0x8] sm:$0x77]  ;;  %v119_v4 = vcombine.high %v115_v2, %v115_v2  ;;  %v114_v6 = vld [vmem:[#allocation6] sm:$0x3]  ;;  %vm121_vm1 = vcmask 23552   ;;  %vm280_vm2 = vcmask 1044480  }
  0x42   :  { %v120_v5 = vcombine.high %v116_v3, %v116_v3  ;;  %v111_v7 = vld [vmem:[#allocation8 + $0x68] sm:$0x1f]  ;;  %v113_v8 = vld [vmem:[#allocation8 + $0x78] sm:$0x1f]  ;;  %v110_v9 = vld [vmem:[#allocation8 + $0x60] sm:$0x1f] }
  0x43   :  { %860 = vmatprep.subr.msk.mxu0 %vm125_vm0, %v119_v4  ;;  %v112_v10 = vld [vmem:[#allocation8 + $0x70] sm:$0x1f]  ;;  %v107_v11 = vld [vmem:[#allocation8 + $0x48] sm:$0xff]  ;;  %v109_v12 = vld [vmem:[#allocation8 + $0x58] sm:$0xff]  ;;  %vm276_vm3 = vcmask 236544   ;;  %vm841_vm4 = vcmask 8192  }
  0x44   :  { %863 = vmatprep.subr.msk.mxu1 %vm125_vm0, %v120_v5  ;;  %861 = vmatpush1.msk.msra.mxu0 %vm125_vm0, %v115_v2  ;;  %v106_v13 = vld [vmem:[#allocation8 + $0x40] sm:$0xff]  ;;  %v108_v14 = vld [vmem:[#allocation8 + $0x50] sm:$0xff]  ;;  %v103_v15 = vld [vmem:[#allocation8 + $0x28] sm:$0xff] }
  0x45   :  { %864 = vmatpush1.msk.msra.mxu1 %vm125_vm0, %v116_v3  ;;  %862 = vmatmul.mubr.msk.f32.vlgmr.msra.gmra.mxu0 %vm121_vm1, %v114_v6  ;;  %v105_v16 = vld [vmem:[#allocation8 + $0x38] sm:$0xff]  ;;  %v102_v17 = vld [vmem:[#allocation8 + $0x20] sm:$0xff]  ;;  %v104_v18 = vld [vmem:[#allocation8 + $0x30] sm:$0xff] }
  0x46   :  { %866 = vmatprep.subr.msk.mxu0 %vm280_vm2, %v111_v7  ;;  %869 = vmatprep.subr.msk.mxu1 %vm280_vm2, %v113_v8  ;;  %v99_v19 = vld [vmem:[#allocation8 + $0x8] sm:$0xff]  ;;  %v101_v20 = vld [vmem:[#allocation8 + $0x18] sm:$0xff]  ;;  %v98_v21 = vld [vmem:[#allocation8] sm:$0xff] }
  0x47   :  { %865 = vmatmul.mubr.msk.f32.vlgmr.msra.gmra.mxu1 %vm121_vm1, %v114_v6  ;;  %867 = vmatpush1.msk.msra.mxu0 %vm280_vm2, %v110_v9  ;;  %v100_v22 = vld [vmem:[#allocation8 + $0x10] sm:$0xff]  ;;  %v97_v23 = vld [vmem:[#allocation3] sm:$0x3]  ;;  %v496_v24 = vld [vmem:[#allocation11 + $0xf8] sm:$0xff] }
  0x48   :  { %870 = vmatpush1.msk.msra.mxu1 %vm280_vm2, %v112_v10  ;;  %319 = vmatprep.subr.mxu0 %v107_v11  ;;  %v560_v25 = vld [vmem:[#allocation11 + $0x2f8] sm:$0xff]  ;;  %v495_v26 = vld [vmem:[#allocation11 + $0xf0] sm:$0xff]  ;;  %v494_v28 = vld [vmem:[#allocation11 + $0xe8] sm:$0xff] }
  0x49   :  { %390 = vmatprep.subr.mxu1 %v109_v12  ;;  %320 = vmatpush1.msra.mxu0 %v106_v13  ;;  %v559_v27 = vld [vmem:[#allocation11 + $0x2f0] sm:$0xff]  ;;  %v558_v29 = vld [vmem:[#allocation11 + $0x2e8] sm:$0xff]  ;;  %v493_v30 = vld [vmem:[#allocation11 + $0xe0] sm:$0xff] }
  0x4a   :  { %391 = vmatpush1.msra.mxu1 %v108_v14  ;;  %321 = vmatprep.subr.mxu0 %v103_v15  ;;  %v557_v31 = vld [vmem:[#allocation11 + $0x2e0] sm:$0xff]  ;;  %v492_v32 = vld [vmem:[#allocation11 + $0xd8] sm:$0xff]  ;;  %v491_v34 = vld [vmem:[#allocation11 + $0xd0] sm:$0xff] }
  0x4b   :  { %392 = vmatprep.subr.mxu1 %v105_v16  ;;  %322 = vmatpush1.msra.mxu0 %v102_v17  ;;  %v556_v33 = vld [vmem:[#allocation11 + $0x2d8] sm:$0xff]  ;;  %v555_v35 = vld [vmem:[#allocation11 + $0x2d0] sm:$0xff]  ;;  %v490_v36 = vld [vmem:[#allocation11 + $0xc8] sm:$0xff] }
  0x4c   :  { %393 = vmatpush1.msra.mxu1 %v104_v18  ;;  %323 = vmatprep.subr.mxu0 %v99_v19  ;;  %v554_v37 = vld [vmem:[#allocation11 + $0x2c8] sm:$0xff]  ;;  %v489_v38 = vld [vmem:[#allocation11 + $0xc0] sm:$0xff]  ;;  %v488_v40 = vld [vmem:[#allocation11 + $0xb8] sm:$0xff] }
  0x4d   :  { %394 = vmatprep.subr.mxu1 %v101_v20  ;;  %324 = vmatpush1.msra.mxu0 %v98_v21  ;;  %v553_v39 = vld [vmem:[#allocation11 + $0x2c0] sm:$0xff]  ;;  %v552_v41 = vld [vmem:[#allocation11 + $0x2b8] sm:$0xff]  ;;  %v487_v42 = vld [vmem:[#allocation11 + $0xb0] sm:$0xff] }
  0x4e   :  { %357 = vmatprep.mubr.f32.mxu0 %v1024_v1  ;;  %395 = vmatpush1.msra.mxu1 %v100_v22  ;;  %v551_v43 = vld [vmem:[#allocation11 + $0x2b0] sm:$0xff]  ;;  %v486_v44 = vld [vmem:[#allocation11 + $0xa8] sm:$0xff]  ;;  %v485_v46 = vld [vmem:[#allocation11 + $0xa0] sm:$0xff] }
  0x4f   :  { %428 = vmatprep.mubr.f32.mxu1 %v1024_v1  ;;  %868 = vmatmul.mubr.msk.f32.vlgmr.msra.gmra.mxu0 %vm276_vm3, %v97_v23  ;;  %v550_v45 = vld [vmem:[#allocation11 + $0x2a8] sm:$0xff]  ;;  %v549_v47 = vld [vmem:[#allocation11 + $0x2a0] sm:$0xff]  ;;  %v484_v48 = vld [vmem:[#allocation11 + $0x98] sm:$0xff] }
  0x50   :  { %871 = vmatmul.mubr.msk.f32.vlgmr.msra.gmra.mxu1 %vm276_vm3, %v97_v23  ;;  %605 = vmatprep.subr.mxu0 %v496_v24  ;;  %v548_v49 = vld [vmem:[#allocation11 + $0x298] sm:$0xff]  ;;  %v483_v50 = vld [vmem:[#allocation11 + $0x90] sm:$0xff]  ;;  %v482_v52 = vld [vmem:[#allocation11 + $0x88] sm:$0xff] }
  0x51   :  { %676 = vmatprep.subr.mxu1 %v560_v25  ;;  %606 = vmatpush1.msra.mxu0 %v495_v26  ;;  %v547_v51 = vld [vmem:[#allocation11 + $0x290] sm:$0xff]  ;;  %v546_v53 = vld [vmem:[#allocation11 + $0x288] sm:$0xff]  ;;  %v481_v54 = vld [vmem:[#allocation11 + $0x80] sm:$0xff] }
  0x52   :  { %677 = vmatpush1.msra.mxu1 %v559_v27  ;;  %607 = vmatprep.subr.mxu0 %v494_v28  ;;  %v545_v55 = vld [vmem:[#allocation11 + $0x280] sm:$0xff]  ;;  %v480_v56 = vld [vmem:[#allocation11 + $0x78] sm:$0xff]  ;;  %v479_v58 = vld [vmem:[#allocation11 + $0x70] sm:$0xff] }
  0x53   :  { %678 = vmatprep.subr.mxu1 %v558_v29  ;;  %608 = vmatpush1.msra.mxu0 %v493_v30  ;;  %v544_v57 = vld [vmem:[#allocation11 + $0x278] sm:$0xff]  ;;  %v543_v59 = vld [vmem:[#allocation11 + $0x270] sm:$0xff]  ;;  %v478_v60 = vld [vmem:[#allocation11 + $0x68] sm:$0xff] }
  0x54   :  { %679 = vmatpush1.msra.mxu1 %v557_v31  ;;  %609 = vmatprep.subr.mxu0 %v492_v32  ;;  %v542_v61 = vld [vmem:[#allocation11 + $0x268] sm:$0xff]  ;;  %v477_v62 = vld [vmem:[#allocation11 + $0x60] sm:$0xff]  ;;  %v476_v0 = vld [vmem:[#allocation11 + $0x58] sm:$0xff] }
  0x55   :  { %680 = vmatprep.subr.mxu1 %v556_v33  ;;  %610 = vmatpush1.msra.mxu0 %v491_v34  ;;  %v541_v63 = vld [vmem:[#allocation11 + $0x260] sm:$0xff]  ;;  %v540_v1 = vld [vmem:[#allocation11 + $0x258] sm:$0xff]  ;;  %v475_v2 = vld [vmem:[#allocation11 + $0x50] sm:$0xff] }
  0x56   :  { %681 = vmatpush1.msra.mxu1 %v555_v35  ;;  %611 = vmatprep.subr.mxu0 %v490_v36  ;;  %v539_v3 = vld [vmem:[#allocation11 + $0x250] sm:$0xff]  ;;  %v474_v4 = vld [vmem:[#allocation11 + $0x48] sm:$0xff]  ;;  %v473_v6 = vld [vmem:[#allocation11 + $0x40] sm:$0xff] }
  0x57   :  { %682 = vmatprep.subr.mxu1 %v554_v37  ;;  %612 = vmatpush1.msra.mxu0 %v489_v38  ;;  %v538_v5 = vld [vmem:[#allocation11 + $0x248] sm:$0xff]  ;;  %v537_v7 = vld [vmem:[#allocation11 + $0x240] sm:$0xff]  ;;  %v472_v8 = vld [vmem:[#allocation11 + $0x38] sm:$0xff] }
  0x58   :  { %683 = vmatpush1.msra.mxu1 %v553_v39  ;;  %613 = vmatprep.subr.mxu0 %v488_v40  ;;  %v536_v9 = vld [vmem:[#allocation11 + $0x238] sm:$0xff]  ;;  %v471_v10 = vld [vmem:[#allocation11 + $0x30] sm:$0xff]  ;;  %v470_v12 = vld [vmem:[#allocation11 + $0x28] sm:$0xff] }
  0x59   :  { %684 = vmatprep.subr.mxu1 %v552_v41  ;;  %614 = vmatpush1.msra.mxu0 %v487_v42  ;;  %v535_v11 = vld [vmem:[#allocation11 + $0x230] sm:$0xff]  ;;  %v534_v13 = vld [vmem:[#allocation11 + $0x228] sm:$0xff]  ;;  %v469_v14 = vld [vmem:[#allocation11 + $0x20] sm:$0xff] }
  0x5a   :  { %685 = vmatpush1.msra.mxu1 %v551_v43  ;;  %615 = vmatprep.subr.mxu0 %v486_v44  ;;  %v533_v15 = vld [vmem:[#allocation11 + $0x220] sm:$0xff]  ;;  %v468_v16 = vld [vmem:[#allocation11 + $0x18] sm:$0xff]  ;;  %v467_v18 = vld [vmem:[#allocation11 + $0x10] sm:$0xff] }
  0x5b   :  { %686 = vmatprep.subr.mxu1 %v550_v45  ;;  %616 = vmatpush1.msra.mxu0 %v485_v46  ;;  %v532_v17 = vld [vmem:[#allocation11 + $0x218] sm:$0xff]  ;;  %v531_v19 = vld [vmem:[#allocation11 + $0x210] sm:$0xff]  ;;  %v466_v20 = vld [vmem:[#allocation11 + $0x8] sm:$0xff] }
  0x5c   :  { %687 = vmatpush1.msra.mxu1 %v549_v47  ;;  %617 = vmatprep.subr.mxu0 %v484_v48  ;;  %v530_v21 = vld [vmem:[#allocation11 + $0x208] sm:$0xff]  ;;  %v465_v22 = vld [vmem:[#allocation11] sm:$0xff]  ;;  %v528_v24 = vld [vmem:[#allocation11 + $0x1f8] sm:$0xff] }
  0x5d   :  { %688 = vmatprep.subr.mxu1 %v548_v49  ;;  %618 = vmatpush1.msra.mxu0 %v483_v50  ;;  %v529_v23 = vld [vmem:[#allocation11 + $0x200] sm:$0xff]  ;;  %v592_v25 = vld [vmem:[#allocation11 + $0x3f8] sm:$0xff]  ;;  %v527_v26 = vld [vmem:[#allocation11 + $0x1f0] sm:$0xff] }
  0x5e   :  { %689 = vmatpush1.msra.mxu1 %v547_v51  ;;  %619 = vmatprep.subr.mxu0 %v482_v52  ;;  %v591_v27 = vld [vmem:[#allocation11 + $0x3f0] sm:$0xff]  ;;  %v526_v28 = vld [vmem:[#allocation11 + $0x1e8] sm:$0xff]  ;;  %v525_v30 = vld [vmem:[#allocation11 + $0x1e0] sm:$0xff] }
  0x5f   :  { %690 = vmatprep.subr.mxu1 %v546_v53  ;;  %620 = vmatpush1.msra.mxu0 %v481_v54  ;;  %v590_v29 = vld [vmem:[#allocation11 + $0x3e8] sm:$0xff]  ;;  %v589_v31 = vld [vmem:[#allocation11 + $0x3e0] sm:$0xff]  ;;  %v524_v32 = vld [vmem:[#allocation11 + $0x1d8] sm:$0xff] }
  0x60   :  { %691 = vmatpush1.msra.mxu1 %v545_v55  ;;  %621 = vmatprep.subr.mxu0 %v480_v56  ;;  %v588_v33 = vld [vmem:[#allocation11 + $0x3d8] sm:$0xff]  ;;  %v523_v34 = vld [vmem:[#allocation11 + $0x1d0] sm:$0xff]  ;;  %v522_v36 = vld [vmem:[#allocation11 + $0x1c8] sm:$0xff] }
  0x61   :  { %692 = vmatprep.subr.mxu1 %v544_v57  ;;  %622 = vmatpush1.msra.mxu0 %v479_v58  ;;  %v587_v35 = vld [vmem:[#allocation11 + $0x3d0] sm:$0xff]  ;;  %v586_v37 = vld [vmem:[#allocation11 + $0x3c8] sm:$0xff]  ;;  %v521_v38 = vld [vmem:[#allocation11 + $0x1c0] sm:$0xff] }
  0x62   :  { %693 = vmatpush1.msra.mxu1 %v543_v59  ;;  %623 = vmatprep.subr.mxu0 %v478_v60  ;;  %v585_v39 = vld [vmem:[#allocation11 + $0x3c0] sm:$0xff]  ;;  %v520_v40 = vld [vmem:[#allocation11 + $0x1b8] sm:$0xff]  ;;  %v519_v42 = vld [vmem:[#allocation11 + $0x1b0] sm:$0xff] }
  0x63   :  { %694 = vmatprep.subr.mxu1 %v542_v61  ;;  %624 = vmatpush1.msra.mxu0 %v477_v62  ;;  %v584_v41 = vld [vmem:[#allocation11 + $0x3b8] sm:$0xff]  ;;  %v583_v43 = vld [vmem:[#allocation11 + $0x3b0] sm:$0xff]  ;;  %v518_v44 = vld [vmem:[#allocation11 + $0x1a8] sm:$0xff] }
  0x64   :  { %695 = vmatpush1.msra.mxu1 %v541_v63  ;;  %625 = vmatprep.subr.mxu0 %v476_v0  ;;  %v582_v45 = vld [vmem:[#allocation11 + $0x3a8] sm:$0xff]  ;;  %v517_v46 = vld [vmem:[#allocation11 + $0x1a0] sm:$0xff]  ;;  %v516_v48 = vld [vmem:[#allocation11 + $0x198] sm:$0xff] }
  0x65   :  { %696 = vmatprep.subr.mxu1 %v540_v1  ;;  %626 = vmatpush1.msra.mxu0 %v475_v2  ;;  %v581_v47 = vld [vmem:[#allocation11 + $0x3a0] sm:$0xff]  ;;  %v580_v49 = vld [vmem:[#allocation11 + $0x398] sm:$0xff]  ;;  %v515_v50 = vld [vmem:[#allocation11 + $0x190] sm:$0xff] }
  0x66   :  { %697 = vmatpush1.msra.mxu1 %v539_v3  ;;  %627 = vmatprep.subr.mxu0 %v474_v4  ;;  %v579_v51 = vld [vmem:[#allocation11 + $0x390] sm:$0xff]  ;;  %v514_v52 = vld [vmem:[#allocation11 + $0x188] sm:$0xff]  ;;  %v513_v54 = vld [vmem:[#allocation11 + $0x180] sm:$0xff] }
  0x67   :  { %698 = vmatprep.subr.mxu1 %v538_v5  ;;  %628 = vmatpush1.msra.mxu0 %v473_v6  ;;  %v578_v53 = vld [vmem:[#allocation11 + $0x388] sm:$0xff]  ;;  %v577_v55 = vld [vmem:[#allocation11 + $0x380] sm:$0xff]  ;;  %v512_v56 = vld [vmem:[#allocation11 + $0x178] sm:$0xff] }
  0x68   :  { %699 = vmatpush1.msra.mxu1 %v537_v7  ;;  %629 = vmatprep.subr.mxu0 %v472_v8  ;;  %v576_v57 = vld [vmem:[#allocation11 + $0x378] sm:$0xff]  ;;  %v511_v58 = vld [vmem:[#allocation11 + $0x170] sm:$0xff]  ;;  %v510_v60 = vld [vmem:[#allocation11 + $0x168] sm:$0xff] }
  0x69   :  { %700 = vmatprep.subr.mxu1 %v536_v9  ;;  %630 = vmatpush1.msra.mxu0 %v471_v10  ;;  %v575_v59 = vld [vmem:[#allocation11 + $0x370] sm:$0xff]  ;;  %v574_v61 = vld [vmem:[#allocation11 + $0x368] sm:$0xff]  ;;  %v509_v62 = vld [vmem:[#allocation11 + $0x160] sm:$0xff] }
  0x6a   :  { %701 = vmatpush1.msra.mxu1 %v535_v11  ;;  %631 = vmatprep.subr.mxu0 %v470_v12  ;;  %v573_v63 = vld [vmem:[#allocation11 + $0x360] sm:$0xff]  ;;  %v508_v0 = vld [vmem:[#allocation11 + $0x158] sm:$0xff]  ;;  %v507_v2 = vld [vmem:[#allocation11 + $0x150] sm:$0xff] }
  0x6b   :  { %702 = vmatprep.subr.mxu1 %v534_v13  ;;  %632 = vmatpush1.msra.mxu0 %v469_v14  ;;  %v572_v1 = vld [vmem:[#allocation11 + $0x358] sm:$0xff]  ;;  %v571_v3 = vld [vmem:[#allocation11 + $0x350] sm:$0xff]  ;;  %v506_v4 = vld [vmem:[#allocation11 + $0x148] sm:$0xff] }
  0x6c   :  { %703 = vmatpush1.msra.mxu1 %v533_v15  ;;  %633 = vmatprep.subr.mxu0 %v468_v16  ;;  %v570_v5 = vld [vmem:[#allocation11 + $0x348] sm:$0xff]  ;;  %v505_v6 = vld [vmem:[#allocation11 + $0x140] sm:$0xff]  ;;  %v504_v8 = vld [vmem:[#allocation11 + $0x138] sm:$0xff] }
  0x6d   :  { %704 = vmatprep.subr.mxu1 %v532_v17  ;;  %634 = vmatpush1.msra.mxu0 %v467_v18  ;;  %v569_v7 = vld [vmem:[#allocation11 + $0x340] sm:$0xff]  ;;  %v568_v9 = vld [vmem:[#allocation11 + $0x338] sm:$0xff]  ;;  %v503_v10 = vld [vmem:[#allocation11 + $0x130] sm:$0xff] }
  0x6e   :  { %705 = vmatpush1.msra.mxu1 %v531_v19  ;;  %635 = vmatprep.subr.mxu0 %v466_v20  ;;  %v567_v11 = vld [vmem:[#allocation11 + $0x330] sm:$0xff]  ;;  %v502_v12 = vld [vmem:[#allocation11 + $0x128] sm:$0xff]  ;;  %v501_v14 = vld [vmem:[#allocation11 + $0x120] sm:$0xff] }
  0x6f   :  { %706 = vmatprep.subr.mxu1 %v530_v21  ;;  %636 = vmatpush1.msra.mxu0 %v465_v22  ;;  %v566_v13 = vld [vmem:[#allocation11 + $0x328] sm:$0xff]  ;;  %v565_v15 = vld [vmem:[#allocation11 + $0x320] sm:$0xff]  ;;  %v500_v16 = vld [vmem:[#allocation11 + $0x118] sm:$0xff] }
  0x70   :  { %707 = vmatpush1.msra.mxu1 %v529_v23  ;;  %637 = vmatprep.subr.mxu0 %v528_v24  ;;  %v564_v17 = vld [vmem:[#allocation11 + $0x318] sm:$0xff]  ;;  %v499_v18 = vld [vmem:[#allocation11 + $0x110] sm:$0xff]  ;;  %v498_v20 = vld [vmem:[#allocation11 + $0x108] sm:$0xff]  ;;  %v437_v24 = vlaneseq }
  0x71   :  { %708 = vmatprep.subr.mxu1 %v592_v25  ;;  %638 = vmatpush2.msra.mxu0 %v527_v26  ;;  %v563_v19 = vld [vmem:[#allocation11 + $0x310] sm:$0xff]  ;;  %v562_v21 = vld [vmem:[#allocation11 + $0x308] sm:$0xff]  ;;  %v497_v22 = vld [vmem:[#allocation11 + $0x100] sm:$0xff] }
  0x72   :  { %709 = vmatpush2.msra.mxu1 %v591_v27  ;;  %639 = vmatprep.subr.mxu0 %v526_v28  ;;  %v561_v23 = vld [vmem:[#allocation11 + $0x300] sm:$0xff]  ;;  %v438_v25 = vshrl.u32 %v437_v24, 7 }
  0x73   :  { %710 = vmatprep.subr.mxu1 %v590_v29  ;;  %640 = vmatpush2.msra.mxu0 %v525_v30  ;;  %v435_v30 = vld [vmem:[%s1115_s4] sm:$0xf] }
  0x74   :  { %711 = vmatpush2.msra.mxu1 %v589_v31  ;;  %641 = vmatprep.subr.mxu0 %v524_v32  ;;  %v439_v28 = vsub.s32 0, %v438_v25  ;;  %v447_v29 = vsub.s32 2, %v438_v25  ;;  %v443_v31 = vsub.s32 1, %v438_v25  ;;  %v451_v32 = vsub.s32 3, %v438_v25 }
  0x75   :  { %712 = vmatprep.subr.mxu1 %v588_v33  ;;  %642 = vmatpush2.msra.mxu0 %v523_v34 }
  0x76   :  { %713 = vmatpush2.msra.mxu1 %v587_v35  ;;  %643 = vmatprep.subr.mxu0 %v522_v36  ;;  %v440_v36 = vrot.slane %v435_v30, %v439_v28 }
  0x77   :  { %714 = vmatprep.subr.mxu1 %v586_v37  ;;  %644 = vmatpush2.msra.mxu0 %v521_v38  ;;  %v448_v38 = vrot.slane %v435_v30, %v447_v29 }
  0x78   :  { %715 = vmatpush2.msra.mxu1 %v585_v39  ;;  %645 = vmatprep.subr.mxu0 %v520_v40 }
  0x79   :  { %716 = vmatprep.subr.mxu1 %v584_v41  ;;  %646 = vmatpush2.msra.mxu0 %v519_v42  ;;  %v444_v41 = vrot.slane %v435_v30, %v443_v31  ;;  %v452_v42 = vrot.slane %v435_v30, %v451_v32 }
  0x7a   :  { %717 = vmatpush2.msra.mxu1 %v583_v43  ;;  %647 = vmatprep.subr.mxu0 %v518_v44 }
  0x7b   :  { %718 = vmatprep.subr.mxu1 %v582_v45  ;;  %648 = vmatpush2.msra.mxu0 %v517_v46 }
  0x7c   :  { %719 = vmatpush2.msra.mxu1 %v581_v47  ;;  %649 = vmatprep.subr.mxu0 %v516_v48 }
  0x7d   :  { %720 = vmatprep.subr.mxu1 %v580_v49  ;;  %650 = vmatpush2.msra.mxu0 %v515_v50 }
  0x7e   :  { %721 = vmatpush2.msra.mxu1 %v579_v51  ;;  %651 = vmatprep.subr.mxu0 %v514_v52 }
  0x7f   :  { %722 = vmatprep.subr.mxu1 %v578_v53  ;;  %652 = vmatpush2.msra.mxu0 %v513_v54 }
  0x80   :  { %723 = vmatpush2.msra.mxu1 %v577_v55  ;;  %653 = vmatprep.subr.mxu0 %v512_v56  ;;  %v749_v55 = vld [vmem:[%s1118_s7] sm:$0x3]  ;;  %s1026_s7 = smov [#allocation12]  }
  0x81   :  { %724 = vmatprep.subr.mxu1 %v576_v57  ;;  %654 = vmatpush2.msra.mxu0 %v511_v58  ;;  %v768_v56 = vrot.slane %v749_v55, %v443_v31  ;;  %v750_v57 = vld [vmem:[#allocation2] sm:$0x1]  ;;  %v1025_v58 = vmov 0  }
  0x82   :  { %725 = vmatpush2.msra.mxu1 %v575_v59  ;;  %655 = vmatprep.subr.mxu0 %v510_v60  ;;  %v593_v59 = vld [vmem:[%s1117_s6] sm:$0x3]  ;;  %s849_s6 = sshll.u32 %s1026_s7, 4  ;;  %s850_s6 = int_to_ptr.vmem [resolvable:$true] %s849_s6 }
  0x83   :  { %726 = vmatprep.subr.mxu1 %v574_v61  ;;  %656 = vmatpush2.msra.mxu0 %v509_v62  ;;  %v598_v60 = vrot.slane %v593_v59, %v439_v28  ;;  %v602_v61 = vrot.slane %v593_v59, %v443_v31  ;;  %s987_s17 = scalar_lea.vmem %s850_s6, 16  ;;  %s991_s18 = scalar_lea.vmem %s850_s6, 32 }
  0x84   :  { %727 = vmatpush2.msra.mxu1 %v573_v63  ;;  %657 = vmatprep.subr.mxu0 %v508_v0  ;;  %p988_p11 = scmp.ne.s32.totalorder %s850_s6, %s987_s17  ;;  %p992_p12 = scmp.lt.s32.totalorder %s850_s6, %s850_s6 }
  0x85   :  { %728 = vmatprep.subr.mxu1 %v572_v1  ;;  %658 = vmatpush2.msra.mxu0 %v507_v2  ;;  %p993_p13 = scmp.lt.s32.totalorder %s991_s18, %s987_s17 }
  0x86   :  { %729 = vmatpush2.msra.mxu1 %v571_v3  ;;  %659 = vmatprep.subr.mxu0 %v506_v4 }
  0x87   :  { %730 = vmatprep.subr.mxu1 %v570_v5  ;;  %660 = vmatpush2.msra.mxu0 %v505_v6  ;;  %p994_p0 = por %p993_p13, %p992_p12 }
  0x88   :  { %731 = vmatpush2.msra.mxu1 %v569_v7  ;;  %661 = vmatprep.subr.mxu0 %v504_v8  ;;  %v764_v8 = vrot.slane %v749_v55, %v439_v28 }
  0x89   :  { %732 = vmatprep.subr.mxu1 %v568_v9  ;;  %662 = vmatpush2.msra.mxu0 %v503_v10  ;;  %p995_p1 = pnand %p994_p0, %p988_p11 }
  0x8a   :  { %733 = vmatpush2.msra.mxu1 %v567_v11  ;;  %663 = vmatprep.subr.mxu0 %v502_v12 }
  0x8b   :  { %734 = vmatprep.subr.mxu1 %v566_v13  ;;  %664 = vmatpush2.msra.mxu0 %v501_v14 }
  0x8c   :  { %735 = vmatpush2.msra.mxu1 %v565_v15  ;;  %665 = vmatprep.subr.mxu0 %v500_v16 }
  0x8d   :  { %736 = vmatprep.subr.mxu1 %v564_v17  ;;  %666 = vmatpush2.msra.mxu0 %v499_v18 }
  0x8e   :  { %737 = vmatpush2.msra.mxu1 %v563_v19  ;;  %667 = vmatprep.subr.mxu0 %v498_v20 }
  0x8f   :  { %738 = vmatprep.subr.mxu1 %v562_v21  ;;  %668 = vmatpush2.msra.mxu0 %v497_v22 }
  0x90   :  { %739 = vmatpush2.msra.mxu1 %v561_v23  ;;  %884 = vset.pattern.permute.xlu0 %v1025_v58 }
  0x91   :  { %753 = vperm.xlu0 %884, %v750_v57  }
 0x105   :  { %v200_v26 = vpop.f32.mrf.mxu0 }
 0x107   :  { %v271_v27 = vpop.f32.mrf.mxu1  ;;  %v202_v33 = vpop.f32.mrf.mxu0 }
 0x109   :  { %v273_v34 = vpop.f32.mrf.mxu1 }
 0x10c   :  { %v754_v9 = vpop.permute.xlu0 %753 }
 0x10d   :  { %v759_v10 = vrot.slane %v754_v9, %v439_v28 }
 0x10f   :  { %v359_v35 = vpop.f32.mrf.mxu0 }
 0x110   :  { %v430_v37 = vpop.f32.mrf.mxu1  ;;  %v360_v39 = vadd.f32 %v359_v35, %v200_v26 }
 0x111   :  { %v431_v40 = vadd.f32 %v430_v37, %v271_v27  ;;  %v361_v43 = vpop.f32.mrf.mxu0 }
 0x112   :  { %v432_v44 = vpop.f32.mrf.mxu1  ;;  %v362_v45 = vadd.f32 %v361_v43, %v202_v33  ;;  %v457_v47 = vadd.f32 %v440_v36, %v360_v39 }
 0x113   :  { %v433_v46 = vadd.f32 %v432_v44, %v273_v34  ;;  %v459_v48 = vadd.f32 %v448_v38, %v431_v40 }
 0x114   :  { %v458_v49 = vadd.f32 %v444_v41, %v362_v45  ;;  %v461_v53 = vmax.f32 %v457_v47, 0.0 }
 0x115   :  { %v460_v50 = vadd.f32 %v452_v42, %v433_v46  ;;  %v463_v54 = vmax.f32 %v459_v48, 0.0 }
 0x116   :  { %v462_v51 = vmax.f32 %v458_v49, 0.0 }
 0x117   :  { %v464_v52 = vmax.f32 %v460_v50, 0.0 }
 0x118   :  { %669 = vmatprep.mubr.f32.mxu0 %v462_v51 }
 0x119   :  { %740 = vmatprep.mubr.f32.mxu1 %v464_v52  ;;  %670 = vmatmul.mubr.f32.vlgmr.msra.gmra.mxu0 %v461_v53 }
 0x11a   :  { %741 = vmatmul.mubr.f32.vlgmr.msra.gmra.mxu1 %v463_v54  ;;  %835 = vmatprep.mubr.f32.mxu0 %v768_v56 }
 0x1d9   :  { %v671_v62 = vpop.f32.mrf.mxu0 }
 0x1da   :  { %v742_v63 = vpop.f32.mrf.mxu1  ;;  %v672_v0 = vadd.f32 %v671_v62, %v598_v60 }
 0x1db   :  { %v673_v1 = vpop.f32.mrf.mxu0 }
 0x1dc   :  { %v674_v2 = vadd.f32 %v673_v1, %v602_v61  ;;  %v743_v3 = vadd.f32 %v742_v63, %v672_v0  ;;  %v744_v4 = vpop.f32.mrf.mxu1 }
 0x1de   :  { %v745_v5 = vadd.f32 %v744_v4, %v674_v2  ;;  %v747_v7 = vmax.f32 %v743_v3, 0.0 }
 0x1e0   :  { %v748_v6 = vmax.f32 %v745_v5, 0.0 }
 0x1e2   :  { %801 = vmatprep.subr.mxu0 %v748_v6 }
 0x1e3   :  { %802 = vmatpush1.xpose.msra.mxu0 %v747_v7 }
 0x1e6   :  { %836 = vmatmul.mubr.f32.vlgmr.msra.gmra.mxu0 %v764_v8 }
 0x2a6   :  { %v837_v11 = vpop.f32.mrf.mxu0 }
 0x2a7   :  { %v838_v12 = vadd.f32 %v837_v11, %v759_v10 }
 0x2a8   :  { %v839_v13 = vpop.f32.mrf.mxu0 }
 0x2a9   :  { %842 = vst.msk [vmem:[#allocation12] sm:$0x1] %vm841_vm4, %v838_v12 }
 0x2aa   :  { %998 = shalt.err (!%p995_p1)
}
 0x2ab   :  { %852 = dma.vmem_to_hbm [thread:$0]  %s850_s6, 16, %s1120_s9, [#allocation5]  }
 0x2ac   :  { %1013 = dma.done.wait [#allocation5], 16  }
 0x2ad   :  { %1014 = vsyncadd [#allocation5], 4294967280 }
 0x2ae   :  { %856 = vsyncpa [#allocation4], 1 }
 0x2af   :  { %857 = vsyncpa [#allocation7], 1 }
 0x2b0   :  { %858 = vsyncpa [#allocation10], 1 }
 0x2b1   :  { %859 = vsyncpa [#allocation5], 1 }

</bundles_post_ra>
